<compile_context>
chip_gen: v5e
topology: v5e:2x2
jax: 0.10.0
libtpu: 0.0.40
codegen_flags: <defaults>
</compile_context>

<pallas_src>
import jax
import jax.numpy as jnp
from jax.experimental import pallas as pl
from jax.experimental.pallas import tpu as pltpu


_MAX_TP = 8192  # pixel-tile cap (multiple of 128); ~0.35-0.7 MB/step moved


def _largest_tile(pix, cap=_MAX_TP):
    """Largest multiple-of-128 divisor of `pix` (pix % 128 == 0) that is <= cap."""
    best = 128
    t = 128
    while t <= cap:
        if pix % t == 0:
            best = t
        t += 128
    return best


def _pixel_tiling(hw, cap=_MAX_TP):
    """Return (padded_pixel_count, tile).

    hw <= cap  -> single whole-array tile (one grid step, no padding needed;
                  full-extent blocks are exempt from the (8,128) rule).
    hw  > cap  -> pad up to a multiple of 128 (or coarser, whichever yields the
                  biggest tile) so a multiple-of-128 tile <= cap always exists
                  and VMEM per step stays bounded.
    """
    if hw <= cap:
        return hw, hw
    best = None
    for align in (128, 1024, cap):
        pix = ((hw + align - 1) // align) * align
        tp = _largest_tile(pix, cap)
        if (best is None or tp > best[1]
                or (tp == best[1] and pix < best[0])):
            best = (pix, tp)
    return best


def _conv1x1_bias_kernel(x_ref, w_ref, b_ref, o_ref):
    # x_ref: (N, C_in, TP)   w_ref: (C_out, C_in)   b_ref: (C_out, 1)
    # o_ref: (N, C_out, TP)  -- pixels are lane-dense on the last axis.
    w = w_ref[...]                    # (C_out, C_in)
    b = b_ref[...]                    # (C_out, 1) fused bias (+ add)
    n_blk, c_in, _ = x_ref.shape
    # Hoist loop-invariant lane-broadcasts of the weight columns out of the
    # batch loop (JAX does not CSE broadcast_in_dim).
    w_cols = [w[:, c:c + 1] for c in range(c_in)]     # each (C_out, 1)
    for n in range(n_blk):            # static, tiny batch loop
        x = x_ref[n]                  # (C_in, TP)
        # K=3, C_out=8: 3-term broadcast FMA on the VPU (MXU would be wasted).
        acc = w_cols[0] * x[0:1, :] + b               # (C_out, TP)
        for c in range(1, c_in):
            acc = acc + w_cols[c] * x[c:c + 1, :]
        o_ref[n] = acc


def conv1x1_pad1_add(x_nchw, weight, bias, add):
    """Equivalent of Conv2d(C_in, C_out, 1, stride=1, padding=1)(x) + add.

    x_nchw : (N, C_in, H, W) float32
    weight : (C_out, C_in, 1, 1) float32
    bias   : (C_out,) float32
    add    : python scalar
    returns: (N, C_out, H+2, W+2) float32
    """
    N, C_in, H, W = x_nchw.shape
    C_out = weight.shape[0]
    Hp, Wp = H + 2, W + 2
    HWp = Hp * Wp

    # Zero-pad the input spatially: a 1x1 conv of the padded input produces the
    # padded output directly (border sees only zeros -> bias + add).
    x_pad = jnp.pad(x_nchw, ((0, 0), (0, 0), (1, 1), (1, 1)))
    x_flat = x_pad.reshape(N, C_in, HWp)              # contiguous collapse

    PIX, TP = _pixel_tiling(HWp)
    if PIX != HWp:                                    # large-input path only
        x_flat = jnp.pad(x_flat, ((0, 0), (0, 0), (0, PIX - HWp)))

    w_mat = weight.reshape(C_out, C_in).astype(jnp.float32)
    b_fused = (bias.astype(jnp.float32)
               + jnp.asarray(add, jnp.float32)).reshape(C_out, 1)

    grid = (PIX // TP,)
    out_flat = pl.pallas_call(
        _conv1x1_bias_kernel,
        out_shape=jax.ShapeDtypeStruct((N, C_out, PIX), jnp.float32),
        grid=grid,
        in_specs=[
            pl.BlockSpec((N, C_in, TP), lambda p: (0, 0, p)),
            pl.BlockSpec((C_out, C_in), lambda p: (0, 0)),
            pl.BlockSpec((C_out, 1), lambda p: (0, 0)),
        ],
        out_specs=pl.BlockSpec((N, C_out, TP), lambda p: (0, 0, p)),
        compiler_params=pltpu.CompilerParams(
            dimension_semantics=("parallel",)),
    )(x_flat, w_mat, b_fused)

    core = out_flat if PIX == HWp else out_flat[:, :, :HWp]
    return core.reshape(N, C_out, Hp, Wp)


if __name__ == "__main__":
    key = jax.random.PRNGKey(0)
    k_x, k_w, k_b = jax.random.split(key, 3)

    N, C_in, H, W = 2, 3, 16, 16
    C_out = 8
    add = 1

    x1 = jax.random.normal(k_x, (N, C_in, H, W), dtype=jnp.float32)
    # deterministic parameter init (Conv2d-like uniform fan-in scaling)
    bound = 1.0 / (C_in ** 0.5)
    weight = jax.random.uniform(k_w, (C_out, C_in, 1, 1),
                                minval=-bound, maxval=bound, dtype=jnp.float32)
    bias = jax.random.uniform(k_b, (C_out,),
                              minval=-bound, maxval=bound, dtype=jnp.float32)

    out = conv1x1_pad1_add(x1, weight, bias, add)
    out = jax.block_until_ready(out)

    # sanity check against a plain-JAX reference of the same computation
    ref_core = jnp.einsum("nchw,oc->nohw", x1, weight.reshape(C_out, C_in))
    ref_core = ref_core + bias[None, :, None, None] + add
    ref = jnp.broadcast_to((bias + add)[None, :, None, None],
                           (N, C_out, H + 2, W + 2))
    ref = ref.at[:, :, 1:H + 1, 1:W + 1].set(ref_core)

    assert out.shape == (N, C_out, H + 2, W + 2)
    assert jnp.allclose(out, ref, atol=1e-5, rtol=1e-5)

    print("KERNEL_OK")
</pallas_src>

<mosaic_0001>
module attributes {stable_mosaic.version = 11 : i64} {
  func.func @_conv1x1_bias_kernel(%arg0: i32, %arg1: memref<2x3x324xf32, #tpu.memory_space<vmem>>, %arg2: memref<8x3xf32, #tpu.memory_space<vmem>>, %arg3: memref<8x1xf32, #tpu.memory_space<vmem>>, %arg4: memref<2x8x324xf32, #tpu.memory_space<vmem>>) attributes {dimension_semantics = [#tpu.dimension_semantics<parallel>], iteration_bounds = array<i64: 1>, scalar_prefetch = 0 : i64, scratch_operands = 0 : i64, tpu.core_type = #tpu.core_type<tc>, window_params = [{transform_indices = @transform_0, window_bounds = array<i64: 2, 3, 324>}, {pipeline_mode = #tpu.pipeline_mode<synchronous>, transform_indices = @transform_1, window_bounds = array<i64: 8, 3>}, {pipeline_mode = #tpu.pipeline_mode<synchronous>, transform_indices = @transform_2, window_bounds = array<i64: 8, 1>}, {transform_indices = @transform_3, window_bounds = array<i64: 2, 8, 324>}]} {
    %c0 = arith.constant 0 : index
    %c0_0 = arith.constant 0 : index
    %0 = vector.load %arg2[%c0, %c0_0] : memref<8x3xf32, #tpu.memory_space<vmem>>, vector<8x3xf32>
    %c0_1 = arith.constant 0 : index
    %c0_2 = arith.constant 0 : index
    %1 = vector.load %arg3[%c0_1, %c0_2] : memref<8x1xf32, #tpu.memory_space<vmem>>, vector<8x1xf32>
    %2 = vector.extract_strided_slice %0 {offsets = [0, 0], sizes = [8, 1], strides = [1, 1]} : vector<8x3xf32> to vector<8x1xf32>
    %3 = vector.extract_strided_slice %0 {offsets = [0, 1], sizes = [8, 1], strides = [1, 1]} : vector<8x3xf32> to vector<8x1xf32>
    %4 = vector.extract_strided_slice %0 {offsets = [0, 2], sizes = [8, 1], strides = [1, 1]} : vector<8x3xf32> to vector<8x1xf32>
    %c0_3 = arith.constant 0 : index
    %c0_4 = arith.constant 0 : index
    %c0_5 = arith.constant 0 : index
    %5 = vector.load %arg1[%c0_3, %c0_4, %c0_5] : memref<2x3x324xf32, #tpu.memory_space<vmem>>, vector<1x3x324xf32>
    %6 = vector.shape_cast %5 : vector<1x3x324xf32> to vector<3x324xf32>
    %7 = vector.extract_strided_slice %6 {offsets = [0, 0], sizes = [1, 324], strides = [1, 1]} : vector<3x324xf32> to vector<1x324xf32>
    %8 = vector.broadcast %2 : vector<8x1xf32> to vector<8x324xf32>
    %9 = vector.broadcast %7 : vector<1x324xf32> to vector<8x324xf32>
    %10 = arith.mulf %8, %9 : vector<8x324xf32>
    %11 = vector.broadcast %1 : vector<8x1xf32> to vector<8x324xf32>
    %12 = arith.addf %10, %11 : vector<8x324xf32>
    %13 = vector.extract_strided_slice %6 {offsets = [1, 0], sizes = [1, 324], strides = [1, 1]} : vector<3x324xf32> to vector<1x324xf32>
    %14 = vector.broadcast %3 : vector<8x1xf32> to vector<8x324xf32>
    %15 = vector.broadcast %13 : vector<1x324xf32> to vector<8x324xf32>
    %16 = arith.mulf %14, %15 : vector<8x324xf32>
    %17 = arith.addf %12, %16 : vector<8x324xf32>
    %18 = vector.extract_strided_slice %6 {offsets = [2, 0], sizes = [1, 324], strides = [1, 1]} : vector<3x324xf32> to vector<1x324xf32>
    %19 = vector.broadcast %4 : vector<8x1xf32> to vector<8x324xf32>
    %20 = vector.broadcast %18 : vector<1x324xf32> to vector<8x324xf32>
    %21 = arith.mulf %19, %20 : vector<8x324xf32>
    %22 = arith.addf %17, %21 : vector<8x324xf32>
    %c0_6 = arith.constant 0 : index
    %c0_7 = arith.constant 0 : index
    %c0_8 = arith.constant 0 : index
    %23 = vector.load %arg4[%c0_6, %c0_7, %c0_8] : memref<2x8x324xf32, #tpu.memory_space<vmem>>, vector<1x8x324xf32>
    %24 = vector.shape_cast %23 : vector<1x8x324xf32> to vector<8x324xf32>
    %25 = vector.shape_cast %22 : vector<8x324xf32> to vector<1x8x324xf32>
    tpu.vector_store %arg4[%c0_6, %c0_7, %c0_8], %25 {strides = array<i32>} : memref<2x8x324xf32, #tpu.memory_space<vmem>>, vector<1x8x324xf32>,
    %c1 = arith.constant 1 : index
    %c0_9 = arith.constant 0 : index
    %c0_10 = arith.constant 0 : index
    %26 = vector.load %arg1[%c1, %c0_9, %c0_10] : memref<2x3x324xf32, #tpu.memory_space<vmem>>, vector<1x3x324xf32>
    %27 = vector.shape_cast %26 : vector<1x3x324xf32> to vector<3x324xf32>
    %28 = vector.extract_strided_slice %27 {offsets = [0, 0], sizes = [1, 324], strides = [1, 1]} : vector<3x324xf32> to vector<1x324xf32>
    %29 = vector.broadcast %2 : vector<8x1xf32> to vector<8x324xf32>
    %30 = vector.broadcast %28 : vector<1x324xf32> to vector<8x324xf32>
    %31 = arith.mulf %29, %30 : vector<8x324xf32>
    %32 = vector.broadcast %1 : vector<8x1xf32> to vector<8x324xf32>
    %33 = arith.addf %31, %32 : vector<8x324xf32>
    %34 = vector.extract_strided_slice %27 {offsets = [1, 0], sizes = [1, 324], strides = [1, 1]} : vector<3x324xf32> to vector<1x324xf32>
    %35 = vector.broadcast %3 : vector<8x1xf32> to vector<8x324xf32>
    %36 = vector.broadcast %34 : vector<1x324xf32> to vector<8x324xf32>
    %37 = arith.mulf %35, %36 : vector<8x324xf32>
    %38 = arith.addf %33, %37 : vector<8x324xf32>
    %39 = vector.extract_strided_slice %27 {offsets = [2, 0], sizes = [1, 324], strides = [1, 1]} : vector<3x324xf32> to vector<1x324xf32>
    %40 = vector.broadcast %4 : vector<8x1xf32> to vector<8x324xf32>
    %41 = vector.broadcast %39 : vector<1x324xf32> to vector<8x324xf32>
    %42 = arith.mulf %40, %41 : vector<8x324xf32>
    %43 = arith.addf %38, %42 : vector<8x324xf32>
    %c1_11 = arith.constant 1 : index
    %c0_12 = arith.constant 0 : index
    %c0_13 = arith.constant 0 : index
    %44 = vector.load %arg4[%c1_11, %c0_12, %c0_13] : memref<2x8x324xf32, #tpu.memory_space<vmem>>, vector<1x8x324xf32>
    %45 = vector.shape_cast %44 : vector<1x8x324xf32> to vector<8x324xf32>
    %46 = vector.shape_cast %43 : vector<8x324xf32> to vector<1x8x324xf32>
    tpu.vector_store %arg4[%c1_11, %c0_12, %c0_13], %46 {strides = array<i32>} : memref<2x8x324xf32, #tpu.memory_space<vmem>>, vector<1x8x324xf32>,
    return
  }
  func.func @transform_0(%arg0: i32) -> (i32, i32, i32) {
    %c0_i32 = arith.constant 0 : i32
    %c0_i32_0 = arith.constant 0 : i32
    %c0_i32_1 = arith.constant 0 : i32
    return %c0_i32, %c0_i32_0, %arg0 : i32, i32, i32
  }
  func.func @transform_1(%arg0: i32) -> (i32, i32) {
    %c0_i32 = arith.constant 0 : i32
    %c0_i32_0 = arith.constant 0 : i32
    %c0_i32_1 = arith.constant 0 : i32
    return %c0_i32, %c0_i32_0 : i32, i32
  }
  func.func @transform_2(%arg0: i32) -> (i32, i32) {
    %c0_i32 = arith.constant 0 : i32
    %c0_i32_0 = arith.constant 0 : i32
    %c0_i32_1 = arith.constant 0 : i32
    return %c0_i32, %c0_i32_0 : i32, i32
  }
  func.func @transform_3(%arg0: i32) -> (i32, i32, i32) {
    %c0_i32 = arith.constant 0 : i32
    %c0_i32_0 = arith.constant 0 : i32
    %c0_i32_1 = arith.constant 0 : i32
    return %c0_i32, %c0_i32_0, %arg0 : i32, i32, i32
  }
}

</mosaic_0001>

<bundles_post_ra>
// kernel: tpu_custom_call.1
= control target key start
LH: loop header
LB: loop body
LE: loop exit
PB: predicated region body
PF: predicated region fallthrough
CT: control target
= control target key end

     0   :  { %v198_v1 = vmov 0   ;;  %v199_v2 = vmov 1   ;;  %s245_s0 = inlined_call_operand.vmem [shape: f32[2,3,324], index: 0, kind: input, shape index: {}]   ;;  %s246_s1 = inlined_call_operand.vmem [shape: f32[8,3], index: 1, kind: input, shape index: {}]   ;;  %s247_s2 = inlined_call_operand.vmem [shape: f32[8,1], index: 2, kind: input, shape index: {}]   ;;  %s248_s3 = inlined_call_operand.hbm [shape: f32[2,8,324], index: 3, kind: output, shape index: {}]  }
   0x1   :  { %v15_v0 = vld [vmem:[%s246_s1] sm:$0xff]  ;;  %168 = vset.pattern.permute.xlu0 %v198_v1  ;;  %169 = vset.pattern.permute.xlu1 %v199_v2 }
   0x2   :  { %8 = vsyncpa [#allocation3], 0  ;;  %21 = vperm.xlu0 %168, %v15_v0   ;;  %47 = vperm.xlu1 %169, %v15_v0   ;;  %v16_v3 = vld [vmem:[%s247_s2] sm:$0xff]  ;;  %v200_v4 = vmov 2   ;;  %v18_v6 = vld [vmem:[%s245_s0 + $0x8] sm:$0x7] }
   0x3   :  { %v17_v5 = vld [vmem:[%s245_s0] sm:$0x77]  ;;  %v160_v7 = vld [vmem:[%s245_s0 + $0xc] sm:$0x77]  ;;  %v161_v10 = vld [vmem:[%s245_s0 + $0x14] sm:$0x7] }
   0x4   :  { %v26_v8 = vperm.slane %v17_v5, 0  ;;  %v27_v9 = vperm.slane %v17_v5, 4  ;;  %v50_v11 = vperm.slane %v17_v5, 1  ;;  %v28_v12 = vperm.slane %v18_v6, 0  ;;  %s201_s0 = smov [#allocation2]   ;;  %s148_s25 = sshll.u32 %s248_s3, 4  ;;  %s149_s25 = int_to_ptr.hbm [resolvable:$true] %s148_s25 }
   0x5   :  { %v51_v13 = vperm.slane %v17_v5, 5  ;;  %v52_v14 = vperm.slane %v18_v6, 1  ;;  %v108_v15 = vperm.slane %v160_v7, 1  ;;  %v109_v16 = vperm.slane %v160_v7, 5  ;;  %s146_s22 = sshll.u32 %s201_s0, 4  ;;  %s202_s26 = smov 384   ;;  %s147_s22 = int_to_ptr.vmem [resolvable:$true] %s146_s22 }
   0x6   :  { %v110_v17 = vperm.slane %v161_v10, 1  ;;  %v32_v18 = vperm.slane %v26_v8, 0  ;;  %v33_v19 = vperm.slane %v27_v9, 0  ;;  %v93_v20 = vperm.slane %v160_v7, 0  ;;  %s203_s27 = smov 24  }
   0x7   :  { %v94_v23 = vperm.slane %v160_v7, 4  ;;  %v95_v24 = vperm.slane %v161_v10, 0  ;;  %v69_v25 = vperm.slane %v17_v5, 2  ;;  %v70_v26 = vperm.slane %v17_v5, 6 }
   0x8   :  { %v71_v27 = vperm.slane %v18_v6, 2  ;;  %v123_v28 = vperm.slane %v160_v7, 2  ;;  %v124_v29 = vperm.slane %v160_v7, 6  ;;  %v125_v30 = vperm.slane %v161_v10, 2 }
   0x9   :  { %v56_v31 = vperm.slane %v50_v11, 1  ;;  %v57_v32 = vperm.slane %v51_v13, 1  ;;  %v58_v33 = vperm.slane %v52_v14, 1  ;;  %v114_v34 = vperm.slane %v108_v15, 1 }
   0xa   :  { %40 = vperm.xlu0 %168, %v16_v3   ;;  %170 = vset.pattern.permute.xlu1 %v200_v4  ;;  %v115_v35 = vperm.slane %v109_v16, 1  ;;  %v116_v36 = vperm.slane %v110_v17, 1  ;;  %v34_v37 = vperm.slane %v28_v12, 0  ;;  %v99_v38 = vperm.slane %v93_v20, 0 }
   0xb   :  { %66 = vperm.xlu1 %170, %v15_v0   ;;  %v100_v39 = vperm.slane %v94_v23, 0  ;;  %v101_v40 = vperm.slane %v95_v24, 0  ;;  %v75_v41 = vperm.slane %v69_v25, 2  ;;  %v76_v42 = vperm.slane %v70_v26, 2 }
   0xc   :  { %v77_v43 = vperm.slane %v71_v27, 2  ;;  %v129_v44 = vperm.slane %v123_v28, 2  ;;  %v130_v45 = vperm.slane %v124_v29, 2  ;;  %v131_v46 = vperm.slane %v125_v30, 2 }
   0xd   :  { %vm86_vm0 = vcmask 556032  }
  0x12   :  { %171 = vset.pattern.permute.xlu0 %v200_v4 }
  0x74   :  { %v22_v21 = vpop.permute.xlu0 %21  ;;  %v48_v22 = vpop.permute.xlu1 %47 }
  0x75   :  { %v59_v47 = vmul.f32 %v56_v31, %v48_v22  ;;  %v60_v48 = vmul.f32 %v57_v32, %v48_v22  ;;  %v61_v49 = vmul.f32 %v58_v33, %v48_v22  ;;  %v117_v50 = vmul.f32 %v114_v34, %v48_v22 }
  0x76   :  { %v35_v51 = vmul.f32 %v32_v18, %v22_v21  ;;  %v36_v52 = vmul.f32 %v33_v19, %v22_v21  ;;  %v37_v53 = vmul.f32 %v34_v37, %v22_v21  ;;  %v102_v54 = vmul.f32 %v99_v38, %v22_v21 }
  0x77   :  { %v118_v55 = vmul.f32 %v115_v35, %v48_v22  ;;  %v119_v56 = vmul.f32 %v116_v36, %v48_v22  ;;  %v103_v57 = vmul.f32 %v100_v39, %v22_v21  ;;  %v104_v58 = vmul.f32 %v101_v40, %v22_v21 }
  0x7c   :  { %v41_v59 = vpop.permute.xlu0 %40 }
  0x7d   :  { %v43_v60 = vadd.f32 %v41_v59, %v35_v51  ;;  %v44_v61 = vadd.f32 %v41_v59, %v36_v52  ;;  %v45_v62 = vadd.f32 %v41_v59, %v37_v53  ;;  %v105_v63 = vadd.f32 %v102_v54, %v41_v59  ;;  %v67_v0 = vpop.permute.xlu1 %66 }
  0x7e   :  { %v106_v1 = vadd.f32 %v103_v57, %v41_v59  ;;  %v107_v2 = vadd.f32 %v104_v58, %v41_v59  ;;  %v78_v3 = vmul.f32 %v75_v41, %v67_v0  ;;  %v79_v4 = vmul.f32 %v76_v42, %v67_v0 }
  0x7f   :  { %v62_v5 = vadd.f32 %v59_v47, %v43_v60  ;;  %v63_v6 = vadd.f32 %v60_v48, %v44_v61  ;;  %v64_v7 = vadd.f32 %v61_v49, %v45_v62  ;;  %v120_v8 = vadd.f32 %v117_v50, %v105_v63 }
  0x80   :  { %v121_v9 = vadd.f32 %v118_v55, %v106_v1  ;;  %v122_v10 = vadd.f32 %v119_v56, %v107_v2  ;;  %v80_v11 = vmul.f32 %v77_v43, %v67_v0  ;;  %v132_v12 = vmul.f32 %v129_v44, %v67_v0 }
  0x81   :  { %v81_v13 = vadd.f32 %v78_v3, %v62_v5  ;;  %v82_v14 = vadd.f32 %v79_v4, %v63_v6  ;;  %v133_v15 = vmul.f32 %v130_v45, %v67_v0  ;;  %v134_v16 = vmul.f32 %v131_v46, %v67_v0 }
  0x82   :  { %v83_v17 = vadd.f32 %v80_v11, %v64_v7  ;;  %v135_v18 = vadd.f32 %v132_v12, %v120_v8 }
  0x83   :  { %84 = vst [vmem:[#allocation2] sm:$0xff] %v81_v13  ;;  %v136_v19 = vadd.f32 %v133_v15, %v121_v9  ;;  %v137_v20 = vadd.f32 %v134_v16, %v122_v10 }
  0x84   :  { %85 = vst [vmem:[#allocation2 + $0x8] sm:$0xff] %v82_v14 }
  0x85   :  { %87 = vst.msk [vmem:[#allocation2 + $0x10] sm:$0xff] %vm86_vm0, %v83_v17 }
  0x86   :  { %139 = vst [vmem:[#allocation2 + $0x18] sm:$0xff] %v135_v18 }
  0x87   :  { %140 = vst [vmem:[#allocation2 + $0x20] sm:$0xff] %v136_v19 }
  0x88   :  { %141 = vst.msk [vmem:[#allocation2 + $0x28] sm:$0xff] %vm86_vm0, %v137_v20 }
  0x89   :  { %154 = dma.vmem_to_hbm [thread:$0]  %s147_s22, 768, %s149_s25, [#allocation3], %s202_s26, %s202_s26, %s203_s27  }
  0x8a   :  { %196 = dma.done.wait [#allocation3], 768  }
  0x8b   :  { %197 = vsyncadd [#allocation3], 4294966528 }
  0x8c   :  { %159 = vsyncpa [#allocation3], 1 }

</bundles_post_ra>
